<compile_context>
chip_gen: v5e
topology: v5e:2x2
jax: 0.10.0
libtpu: 0.0.40
codegen_flags: <defaults>
</compile_context>

<pallas_src>
import math
import jax
import jax.numpy as jnp
from jax.experimental import pallas as pl
from jax.experimental.pallas import tpu as pltpu


def attention_dot_kernel(relation_ref, sent_ref, mask_ref, att_ref, wgt_ref):
    """One batch block (BB rows) per grid step.

    relation_ref : (BB, H)    precomputed rel2att(rel) for this block
    sent_ref     : (BB, L, H) sentence states for this block
    mask_ref     : (BB, L)    mask (float) for this block
    att_ref      : (BB, H)    output attended vectors
    wgt_ref      : (BB, L)    output attention weights
    """
    relation = relation_ref[...].astype(jnp.float32)       # (BB, H)
    sent = sent_ref[...].astype(jnp.float32)                # (BB, L, H)
    mask = mask_ref[...].astype(jnp.float32)                # (BB, L)

    # scores[b, l] = sum_h relation[b, h] * sent[b, l, h]
    # VPU multiply + lane-axis (H) reduce — no transpose, no MXU push/pop.
    scores = jnp.sum(relation[:, None, :] * sent, axis=-1)  # (BB, L)

    # Multiplicative masking BEFORE softmax (exactly as in the PyTorch module).
    scores = scores * mask

    # Softmax over L (max-subtracted, same as torch.softmax).
    m = jnp.max(scores, axis=-1, keepdims=True)
    e = jnp.exp(scores - m)
    denom = jnp.sum(e, axis=-1, keepdims=True)
    # Exact reciprocal: `weight` is returned to the caller, keep it bit-close
    # to torch.softmax (approx=True would introduce ~1e-3 relative error).
    weight = e * pl.reciprocal(denom, approx=False)          # (BB, L)

    # att[b, h] = sum_l weight[b, l] * sent[b, l, h]
    # VPU multiply + sublane-axis (L) reduce.
    att = jnp.sum(weight[:, :, None] * sent, axis=1)         # (BB, H)

    att_ref[...] = att.astype(att_ref.dtype)
    wgt_ref[...] = weight.astype(wgt_ref.dtype)


def _choose_block_b(batch, seq, hidden, bytes_per_elem=4,
                    vmem_budget_bytes=4 * 1024 * 1024):
    """Pick a batch block size: multiple of 8 (f32 sublane), sized so a
    double-buffered block set fits comfortably inside the default scoped
    VMEM on every generation (v5e 16 MiB default, v7x 64 MiB physical)."""
    per_row = (seq * hidden          # sent
               + seq + hidden        # mask + relation
               + seq + hidden        # outputs
               ) * bytes_per_elem
    bb = vmem_budget_bytes // (2 * per_row)   # x2 for double buffering
    bb = max(8, min(512, (bb // 8) * 8))
    # Don't over-pad tiny batches.
    batch_padded_to_8 = ((batch + 7) // 8) * 8
    return min(bb, batch_padded_to_8)


def attention_dot(sent, rel, mask, w, b, *, block_b=None):
    """sent: (B, L, H)  rel: (B, R)  mask: (B, L)  w: (H, R)  b: (H,)"""
    B, L, H = sent.shape

    # --- Hoisted rel2att Linear: one dense (B,R)x(R,H) GEMM on the MXU via
    # XLA, instead of a per-grid-step (1,R) matvec + weight transpose.
    relation = (rel.astype(jnp.float32) @ w.astype(jnp.float32).T
                + b.astype(jnp.float32)[None, :])            # (B, H)

    if block_b is None:
        block_b = _choose_block_b(B, L, H)
    BB = block_b
    n_blocks = pl.cdiv(B, BB)
    Bp = n_blocks * BB
    pad = Bp - B

    sent_f = sent.astype(jnp.float32)
    mask_f = mask.astype(jnp.float32)
    if pad:
        # Padded rows: relation=0, sent=0, mask=0 -> scores=0 -> uniform
        # softmax, att=0. No NaNs; sliced off below.
        relation = jnp.pad(relation, ((0, pad), (0, 0)))
        sent_f = jnp.pad(sent_f, ((0, pad), (0, 0), (0, 0)))
        mask_f = jnp.pad(mask_f, ((0, pad), (0, 0)))

    # Rough per-block VMEM need (double-buffered ins + outs), with headroom.
    block_bytes = 2 * BB * (L * H + 2 * L + 2 * H) * 4
    vmem_limit = min(max(4 * block_bytes, 16 * 1024 * 1024), 48 * 1024 * 1024)

    grid_spec = pltpu.PrefetchScalarGridSpec(
        num_scalar_prefetch=0,
        grid=(n_blocks,),
        in_specs=[
            pl.BlockSpec((BB, H), lambda i: (i, 0)),         # relation
            pl.BlockSpec((BB, L, H), lambda i: (i, 0, 0)),   # sent
            pl.BlockSpec((BB, L), lambda i: (i, 0)),         # mask
        ],
        out_specs=[
            pl.BlockSpec((BB, H), lambda i: (i, 0)),         # att_res
            pl.BlockSpec((BB, L), lambda i: (i, 0)),         # weight
        ],
    )

    att_res, weight = pl.pallas_call(
        attention_dot_kernel,
        out_shape=(
            jax.ShapeDtypeStruct((Bp, H), jnp.float32),
            jax.ShapeDtypeStruct((Bp, L), jnp.float32),
        ),
        grid_spec=grid_spec,
        compiler_params=pltpu.CompilerParams(
            dimension_semantics=("parallel",),
            vmem_limit_bytes=vmem_limit),
    )(relation, sent_f, mask_f)

    return att_res[:B], weight[:B]


def reference(sent, rel, mask, w, b):
    relation = rel @ w.T + b                                   # (B, H)
    weight = jnp.einsum('bh,blh->bl', relation, sent)          # (B, L)
    weight = weight * mask
    weight = jax.nn.softmax(weight, axis=-1)
    att_res = jnp.einsum('bl,blh->bh', weight, sent)           # (B, H)
    return att_res, weight


if __name__ == "__main__":
    # opt.rel_dim = 16, opt.att_hidden_size = 32
    B, L, R, H = 2, 8, 16, 32

    key = jax.random.PRNGKey(0)
    k1, k2, k3, k4, k5 = jax.random.split(key, 5)

    sent = jax.random.normal(k1, (B, L, H), dtype=jnp.float32)
    rel = jax.random.normal(k2, (B, R), dtype=jnp.float32)
    # mask: ones with some trailing zeros (like padded sequences)
    mask = jnp.concatenate(
        [jnp.ones((B, L - 2), jnp.float32), jnp.zeros((B, 2), jnp.float32)],
        axis=1)

    # rel2att: Linear(rel_dim, att_hidden_size); xavier_uniform_ weight,
    # default torch bias init uniform(-1/sqrt(fan_in), 1/sqrt(fan_in)).
    xav = math.sqrt(6.0 / (R + H))
    w = jax.random.uniform(k3, (H, R), jnp.float32, minval=-xav, maxval=xav)
    bbound = 1.0 / math.sqrt(R)
    b = jax.random.uniform(k4, (H,), jnp.float32, minval=-bbound, maxval=bbound)

    att_res, weight = attention_dot(sent, rel, mask, w, b)
    jax.block_until_ready((att_res, weight))

    att_ref, wgt_ref = reference(sent, rel, mask, w, b)
    assert att_res.shape == (B, H) and weight.shape == (B, L)
    assert jnp.allclose(att_res, att_ref, atol=2e-5, rtol=2e-5)
    assert jnp.allclose(weight, wgt_ref, atol=2e-5, rtol=2e-5)

    print("KERNEL_OK")
</pallas_src>

<mosaic_0001>
module attributes {stable_mosaic.version = 11 : i64} {
  func.func @attention_dot_kernel(%arg0: i32, %arg1: memref<8x32xf32, #tpu.memory_space<vmem>>, %arg2: memref<8x8x32xf32, #tpu.memory_space<vmem>>, %arg3: memref<8x8xf32, #tpu.memory_space<vmem>>, %arg4: memref<8x32xf32, #tpu.memory_space<vmem>>, %arg5: memref<8x8xf32, #tpu.memory_space<vmem>>) attributes {dimension_semantics = [#tpu.dimension_semantics<parallel>], iteration_bounds = array<i64: 1>, scalar_prefetch = 0 : i64, scratch_operands = 0 : i64, tpu.core_type = #tpu.core_type<tc>, window_params = [{transform_indices = @transform_0, window_bounds = array<i64: 8, 32>}, {transform_indices = @transform_1, window_bounds = array<i64: 8, 8, 32>}, {transform_indices = @transform_2, window_bounds = array<i64: 8, 8>}, {transform_indices = @transform_3, window_bounds = array<i64: 8, 32>}, {transform_indices = @transform_4, window_bounds = array<i64: 8, 8>}]} {
    %c0 = arith.constant 0 : index
    %c0_0 = arith.constant 0 : index
    %0 = vector.load %arg1[%c0, %c0_0] : memref<8x32xf32, #tpu.memory_space<vmem>>, vector<8x32xf32>
    %c0_1 = arith.constant 0 : index
    %c0_2 = arith.constant 0 : index
    %c0_3 = arith.constant 0 : index
    %1 = vector.load %arg2[%c0_1, %c0_2, %c0_3] : memref<8x8x32xf32, #tpu.memory_space<vmem>>, vector<8x8x32xf32>
    %c0_4 = arith.constant 0 : index
    %c0_5 = arith.constant 0 : index
    %2 = vector.load %arg3[%c0_4, %c0_5] : memref<8x8xf32, #tpu.memory_space<vmem>>, vector<8x8xf32>
    %3 = vector.shape_cast %0 : vector<8x32xf32> to vector<8x1x32xf32>
    %4 = vector.broadcast %3 : vector<8x1x32xf32> to vector<8x8x32xf32>
    %5 = arith.mulf %4, %1 : vector<8x8x32xf32>
    %cst = arith.constant dense<0.000000e+00> : vector<8x8xf32>
    %6 = vector.multi_reduction <add>, %5, %cst [2] : vector<8x8x32xf32> to vector<8x8xf32>
    %7 = arith.mulf %6, %2 : vector<8x8xf32>
    %cst_6 = arith.constant dense<0xFF800000> : vector<8xf32>
    %8 = vector.multi_reduction <maximumf>, %7, %cst_6 [1] : vector<8x8xf32> to vector<8xf32>
    %9 = vector.shape_cast %8 : vector<8xf32> to vector<8x1xf32>
    %10 = vector.broadcast %9 : vector<8x1xf32> to vector<8x8xf32>
    %11 = arith.subf %7, %10 : vector<8x8xf32>
    %12 = math.exp %11 : vector<8x8xf32>
    %cst_7 = arith.constant dense<0.000000e+00> : vector<8xf32>
    %13 = vector.multi_reduction <add>, %12, %cst_7 [1] : vector<8x8xf32> to vector<8xf32>
    %14 = vector.shape_cast %13 : vector<8xf32> to vector<8x1xf32>
    %15 = tpu.reciprocal %14 : vector<8x1xf32> -> vector<8x1xf32>
    %16 = vector.broadcast %15 : vector<8x1xf32> to vector<8x8xf32>
    %17 = arith.mulf %12, %16 : vector<8x8xf32>
    %18 = vector.shape_cast %17 : vector<8x8xf32> to vector<8x8x1xf32>
    %19 = vector.broadcast %18 : vector<8x8x1xf32> to vector<8x8x32xf32>
    %20 = arith.mulf %19, %1 : vector<8x8x32xf32>
    %cst_8 = arith.constant dense<0.000000e+00> : vector<8x32xf32>
    %21 = vector.multi_reduction <add>, %20, %cst_8 [1] : vector<8x8x32xf32> to vector<8x32xf32>
    %c0_9 = arith.constant 0 : index
    %c0_10 = arith.constant 0 : index
    %22 = vector.load %arg4[%c0_9, %c0_10] : memref<8x32xf32, #tpu.memory_space<vmem>>, vector<8x32xf32>
    tpu.vector_store %arg4[%c0_9, %c0_10], %21 {strides = array<i32>} : memref<8x32xf32, #tpu.memory_space<vmem>>, vector<8x32xf32>,
    %c0_11 = arith.constant 0 : index
    %c0_12 = arith.constant 0 : index
    %23 = vector.load %arg5[%c0_11, %c0_12] : memref<8x8xf32, #tpu.memory_space<vmem>>, vector<8x8xf32>
    tpu.vector_store %arg5[%c0_11, %c0_12], %17 {strides = array<i32>} : memref<8x8xf32, #tpu.memory_space<vmem>>, vector<8x8xf32>,
    return
  }
  func.func @transform_0(%arg0: i32) -> (i32, i32) {
    %c0_i32 = arith.constant 0 : i32
    %c0_i32_0 = arith.constant 0 : i32
    return %arg0, %c0_i32 : i32, i32
  }
  func.func @transform_1(%arg0: i32) -> (i32, i32, i32) {
    %c0_i32 = arith.constant 0 : i32
    %c0_i32_0 = arith.constant 0 : i32
    %c0_i32_1 = arith.constant 0 : i32
    return %arg0, %c0_i32, %c0_i32_0 : i32, i32, i32
  }
  func.func @transform_2(%arg0: i32) -> (i32, i32) {
    %c0_i32 = arith.constant 0 : i32
    %c0_i32_0 = arith.constant 0 : i32
    return %arg0, %c0_i32 : i32, i32
  }
  func.func @transform_3(%arg0: i32) -> (i32, i32) {
    %c0_i32 = arith.constant 0 : i32
    %c0_i32_0 = arith.constant 0 : i32
    return %arg0, %c0_i32 : i32, i32
  }
  func.func @transform_4(%arg0: i32) -> (i32, i32) {
    %c0_i32 = arith.constant 0 : i32
    %c0_i32_0 = arith.constant 0 : i32
    return %arg0, %c0_i32 : i32, i32
  }
}

</mosaic_0001>

<bundles_post_ra>
// kernel: tpu_custom_call.1
= control target key start
LH: loop header
LB: loop body
LE: loop exit
PB: predicated region body
PF: predicated region fallthrough
CT: control target
= control target key end

     0   :  { %10 = vsyncpa [#allocation3], 0  ;;  %s929_s0 = inlined_call_operand.hbm [shape: f32[8,32], index: 0, kind: input, shape index: {}]   ;;  %s930_s1 = inlined_call_operand.hbm [shape: f32[8,8,32], index: 1, kind: input, shape index: {}]   ;;  %s931_s2 = inlined_call_operand.hbm [shape: f32[8,8], index: 2, kind: input, shape index: {}]   ;;  %s932_s3 = inlined_call_operand.hbm [shape: f32[8,32], index: 3, kind: output, shape index: {0}]   ;;  %s933_s4 = inlined_call_operand.hbm [shape: f32[8,8], index: 4, kind: output, shape index: {1}]  }
   0x1   :  { %11 = vsyncpa [#allocation6], 0 }
   0x2   :  { %12 = vsyncpa [#allocation4], 0  ;;  %s29_s17 = sshll.u32 %s930_s1, 4  ;;  %s30_s17 = int_to_ptr.hbm [resolvable:$true] %s29_s17 }
   0x3   :  { %13 = vsyncpa [#allocation10], 0  ;;  %s725_s18 = smov [#allocation5]   ;;  %s19_s22 = sshll.u32 %s929_s0, 4  ;;  %s20_s22 = int_to_ptr.hbm [resolvable:$true] %s19_s22 }
   0x4   :  { %s31_s19 = sshll.u32 %s725_s18, 4  ;;  %s726_s23 = smov 128   ;;  %s32_s19 = int_to_ptr.vmem [resolvable:$true] %s31_s19 }
   0x5   :  { %s727_s24 = smov 8   ;;  %s728_s25 = smov [#allocation2]  }
   0x6   :  { %37 = dma.hbm_to_vmem [thread:$0]  %s30_s17, 1024, %s32_s19, [#allocation6], %s726_s23, %s726_s23, %s727_s24  }
   0x7   :  { %s21_s26 = sshll.u32 %s728_s25, 4  ;;  %s43_s29 = sshll.u32 %s931_s2, 4  ;;  %s22_s26 = int_to_ptr.vmem [resolvable:$true] %s21_s26  ;;  %s44_s29 = int_to_ptr.hbm [resolvable:$true] %s43_s29 }
   0x8   :  { %24 = dma.hbm_to_vmem [thread:$0]  %s20_s22, 128, %s22_s26, [#allocation3]  }
   0x9   :  { %s729_s1 = smov [#allocation7]  }
   0xa   :  { %s45_s30 = sshll.u32 %s729_s1, 4  ;;  %s46_s30 = int_to_ptr.vmem [resolvable:$true] %s45_s30 }
   0xb   :  { %48 = dma.hbm_to_vmem [thread:$0]  %s44_s29, 128, %s46_s30, [#allocation6]  }
   0xc   :  { %717 = dma.done.wait [#allocation3], 128  }
   0xd   :  { %718 = vsyncadd [#allocation3], 4294967168 }
   0xe   :  { %719 = dma.done.wait [#allocation6], 1152  }
   0xf   :  { %720 = vsyncadd [#allocation6], 4294966144  ;;  %v130_v0 = vlaneseq  ;;  %v61_v2 = vld [vmem:[#allocation2] sm:$0xff]  ;;  %v768_v3 = vld [vmem:[#allocation5] sm:$0xff]  ;;  %vm103_vm0 = vcmask 261120   ;;  %v730_v51 = vmov 0  }
  0x10   :  { %v79_v4 = vperm.slane %v61_v2, 0  ;;  %v74_v5 = vrot.slane %v61_v2, 3  ;;  %v73_v6 = vrot.slane %v61_v2, 2  ;;  %v72_v7 = vrot.slane %v61_v2, 1  ;;  %v770_v8 = vld [vmem:[#allocation5 + $0x18] sm:$0xff]  ;;  %v772_v9 = vld [vmem:[#allocation5 + $0x10] sm:$0xff] }
  0x11   :  { %v131_v1 = vshrl.u32 %v130_v0, 7  ;;  %v75_v10 = vrot.slane %v61_v2, 4  ;;  %v775_v15 = vld [vmem:[#allocation5 + $0x8] sm:$0xff]  ;;  %v780_v20 = vld [vmem:[#allocation5 + $0x20] sm:$0xff]  ;;  %v77_v25 = vrot.slane %v61_v2, 6  ;;  %v788_v29 = vld [vmem:[#allocation5 + $0x30] sm:$0xff] }
  0x12   :  { %v95_v11 = vmul.f32 %v79_v4, %v768_v3  ;;  %v82_v12 = vperm.slane %v74_v5, 0  ;;  %v81_v13 = vperm.slane %v73_v6, 0  ;;  %v80_v14 = vperm.slane %v72_v7, 0  ;;  %v792_v34 = vld [vmem:[#allocation5 + $0x38] sm:$0xff]  ;;  %v70_v35 = vld [vmem:[#allocation7] sm:$0xff]  ;;  %v796_v48 = vld [vmem:[#allocation5 + $0x28] sm:$0xff] }
  0x13   :  { %573 = vset.pattern.permute.xlu2 %v131_v1  ;;  %574 = vset.pattern.permute.xlu0 %v131_v1  ;;  %v83_v19 = vperm.slane %v75_v10, 0  ;;  %v85_v28 = vperm.slane %v77_v25, 0  ;;  %v78_v31 = vrot.slane %v61_v2, 7  ;;  %v136_v37 = vperm.slane %v70_v35, 1  ;;  %s731_s0 = smov [#allocation9]   ;;  %s549_s7 = sshll.u32 %s933_s4, 4  ;;  %s550_s7 = int_to_ptr.hbm [resolvable:$true] %s549_s7 }
  0x14   :  { %575 = vset.pattern.permute.xlu1 %v131_v1  ;;  %v104_v16 = vsel %vm103_vm0, %v95_v11, 0.0  ;;  %v98_v17 = vmul.f32 %v82_v12, %v770_v8  ;;  %v97_v18 = vmul.f32 %v81_v13, %v772_v9  ;;  %v96_v23 = vmul.f32 %v80_v14, %v775_v15  ;;  %s547_s2 = sshll.u32 %s731_s0, 4  ;;  %s732_s4 = smov [#allocation8]   ;;  %s548_s2 = int_to_ptr.vmem [resolvable:$true] %s547_s2 }
  0x15   :  { %105 = vadd.xlane.f32.xlu0 %v104_v16  ;;  %v99_v24 = vmul.f32 %v83_v19, %v780_v20  ;;  %v101_v30 = vmul.f32 %v85_v28, %v788_v29  ;;  %v86_v33 = vperm.slane %v78_v31, 0  ;;  %v143_v39 = vperm.slane %v70_v35, 2  ;;  %s536_s8 = sshll.u32 %s732_s4, 4  ;;  %s538_s11 = sshll.u32 %s932_s3, 4  ;;  %s537_s8 = int_to_ptr.vmem [resolvable:$true] %s536_s8  ;;  %s539_s11 = int_to_ptr.hbm [resolvable:$true] %s538_s11 }
  0x16   :  { %v113_v21 = vsel %vm103_vm0, %v98_v17, 0.0  ;;  %v110_v22 = vsel %vm103_vm0, %v97_v18, 0.0  ;;  %v107_v26 = vsel %vm103_vm0, %v96_v23, 0.0  ;;  %v150_v40 = vperm.slane %v70_v35, 3 }
  0x17   :  { %114 = vadd.xlane.f32.xlu2 %v113_v21  ;;  %111 = vadd.xlane.f32.xlu1 %v110_v22  ;;  %v116_v27 = vsel %vm103_vm0, %v99_v24, 0.0  ;;  %v122_v32 = vsel %vm103_vm0, %v101_v30, 0.0  ;;  %v102_v36 = vmul.f32 %v86_v33, %v792_v34  ;;  %v157_v41 = vperm.slane %v70_v35, 4 }
  0x18   :  { %v164_v42 = vperm.slane %v70_v35, 5  ;;  %v129_v43 = vperm.slane %v70_v35, 0  ;;  %v171_v44 = vperm.slane %v70_v35, 6  ;;  %v178_v45 = vperm.slane %v70_v35, 7 }
  0x19   :  { %v125_v38 = vsel %vm103_vm0, %v102_v36, 0.0  ;;  %v76_v46 = vrot.slane %v61_v2, 5  ;;  %v813_v21 = vand.u32 127, %v130_v0  ;;  %vm243_vm1 = vcmask 1041409  }
  0x1a   :  { %vm245_vm2 = vcmask 1042434   ;;  %vm247_vm3 = vcmask 1043459   ;;  %vm249_vm4 = vcmask 1044484   ;;  %vm251_vm5 = vcmask 1045509  }
  0x1b   :  { %v84_v47 = vperm.slane %v76_v46, 0  ;;  %vm253_vm6 = vcmask 1046534   ;;  %vm255_vm7 = vcmask 1047559   ;;  %vm258_vm8 = vcmask 64512  }
  0x1d   :  { %108 = vadd.xlane.f32.xlu0 %v107_v26  ;;  %v100_v49 = vmul.f32 %v84_v47, %v796_v48 }
  0x1f   :  { %117 = vadd.xlane.f32.xlu1 %v116_v27  ;;  %v119_v50 = vsel %vm103_vm0, %v100_v49, 0.0 }
  0x27   :  { %123 = vadd.xlane.f32.xlu1 %v122_v32 }
  0x2f   :  { %141 = vperm.xlu2 %573, %v136_v37   ;;  %126 = vadd.xlane.f32.xlu1 %v125_v38 }
  0x31   :  { %148 = vperm.xlu0 %574, %v143_v39  }
  0x37   :  { %155 = vperm.xlu2 %573, %v150_v40  }
  0x39   :  { %577 = vset.pattern.permute.xlu0 %v730_v51 }
  0x3f   :  { %162 = vperm.xlu2 %573, %v157_v41  }
  0x47   :  { %169 = vperm.xlu2 %573, %v164_v42  }
  0x48   :  { %134 = vperm.xlu1 %575, %v129_v43  }
  0x4f   :  { %176 = vperm.xlu2 %573, %v171_v44  }
  0x50   :  { %183 = vperm.xlu1 %575, %v178_v45  }
  0x57   :  { %576 = vset.pattern.permute.xlu2 %v730_v51 }
  0x58   :  { %578 = vset.pattern.permute.xlu1 %v730_v51 }
  0x5b   :  { %120 = vadd.xlane.f32.xlu0 %v119_v50 }
  0x88   :  { %v106_v52 = vpop.xlane.xlu0 %105 }
  0x8a   :  { %v115_v53 = vpop.xlane.xlu2 %114  ;;  %v112_v57 = vpop.xlane.xlu1 %111 }
  0x90   :  { %v109_v54 = vpop.xlane.xlu0 %108 }
  0x92   :  { %v142_v55 = vpop.permute.xlu2 %141  ;;  %v118_v59 = vpop.xlane.xlu1 %117 }
  0x93   :  { %v800_v56 = vmul.f32 %v142_v55, %v109_v54 }
  0x95   :  { %213 = vperm.xlu0 %577, %v800_v56  }
  0x9a   :  { %v156_v58 = vpop.permute.xlu2 %155  ;;  %v124_v62 = vpop.xlane.xlu1 %123 }
  0x9b   :  { %v196_v11 = vmul.f32 %v156_v58, %v115_v53 }
  0xa2   :  { %v163_v60 = vpop.permute.xlu2 %162  ;;  %v127_v1 = vpop.xlane.xlu1 %126 }
  0xa3   :  { %v803_v61 = vmul.f32 %v163_v60, %v118_v59  ;;  %v149_v7 = vpop.permute.xlu0 %148 }
  0xa4   :  { %v195_v10 = vmul.f32 %v149_v7, %v112_v57 }
  0xa5   :  { %222 = vperm.xlu1 %578, %v803_v61  }
  0xaa   :  { %v170_v63 = vpop.permute.xlu2 %169 }
  0xb2   :  { %v177_v2 = vpop.permute.xlu2 %176 }
  0xb3   :  { %v806_v4 = vmul.f32 %v177_v2, %v124_v62 }
  0xb5   :  { %228 = vperm.xlu1 %578, %v806_v4  }
  0xba   :  { %v135_v5 = vpop.permute.xlu1 %134 }
  0xbb   :  { %v193_v6 = vmul.f32 %v135_v5, %v106_v52 }
  0xbd   :  { %210 = vperm.xlu2 %576, %v193_v6  }
  0xc2   :  { %v184_v14 = vpop.permute.xlu1 %183 }
  0xc3   :  { %v809_v16 = vmul.f32 %v184_v14, %v127_v1 }
  0xc5   :  { %216 = vperm.xlu2 %576, %v195_v10  }
  0xcd   :  { %219 = vperm.xlu2 %576, %v196_v11  }
  0xce   :  { %v121_v12 = vpop.xlane.xlu0 %120 }
  0xcf   :  { %v198_v13 = vmul.f32 %v170_v63, %v121_v12 }
  0xd5   :  { %225 = vperm.xlu2 %576, %v198_v13  }
  0xdd   :  { %231 = vperm.xlu2 %576, %v809_v16  }
 0x107   :  { %v214_v22 = vpop.permute.xlu0 %213 }
 0x108   :  { %v236_v26 = vperm.slane %v214_v22, %v813_v21 }
 0x117   :  { %v211_v17 = vpop.permute.xlu2 %210  ;;  %v223_v24 = vpop.permute.xlu1 %222 }
 0x118   :  { %v235_v23 = vperm.slane %v211_v17, %v813_v21  ;;  %v239_v33 = vperm.slane %v223_v24, %v813_v21 }
 0x11a   :  { %v244_v30 = vsel %vm243_vm1, %v236_v26, %v235_v23 }
 0x11f   :  { %v217_v18 = vpop.permute.xlu2 %216 }
 0x120   :  { %v237_v25 = vperm.slane %v217_v18, %v813_v21 }
 0x122   :  { %v246_v31 = vsel %vm245_vm2, %v237_v25, %v244_v30 }
 0x127   :  { %v220_v19 = vpop.permute.xlu2 %219  ;;  %v229_v35 = vpop.permute.xlu1 %228 }
 0x128   :  { %v238_v27 = vperm.slane %v220_v19, %v813_v21  ;;  %v241_v38 = vperm.slane %v229_v35, %v813_v21 }
 0x12a   :  { %v248_v0 = vsel %vm247_vm3, %v238_v27, %v246_v31 }
 0x12b   :  { %v250_v36 = vsel %vm249_vm4, %v239_v33, %v248_v0 }
 0x12f   :  { %v226_v28 = vpop.permute.xlu2 %225 }
 0x130   :  { %v240_v32 = vperm.slane %v226_v28, %v813_v21 }
 0x132   :  { %v252_v37 = vsel %vm251_vm5, %v240_v32, %v250_v36 }
 0x133   :  { %v254_v41 = vsel %vm253_vm6, %v241_v38, %v252_v37 }
 0x137   :  { %v232_v39 = vpop.permute.xlu2 %231 }
 0x138   :  { %v242_v40 = vperm.slane %v232_v39, %v813_v21 }
 0x13a   :  { %v256_v42 = vsel %vm255_vm7, %v242_v40, %v254_v41 }
 0x13b   :  { %v259_v43 = vsel %vm258_vm8, %v256_v42, -inf }
 0x13c   :  { %260 = vmax.xlane.f32.xlu1 %v259_v43 }
 0x1af   :  { %v261_v44 = vpop.xlane.xlu1 %260 }
 0x1b0   :  { %v264_v45 = vperm.slane %v261_v44, 1  ;;  %v263_v46 = vperm.slane %v261_v44, 0  ;;  %v266_v50 = vperm.slane %v261_v44, 3  ;;  %v265_v51 = vperm.slane %v261_v44, 2 }
 0x1b1   :  { %v268_v58 = vperm.slane %v261_v44, 5  ;;  %v267_v60 = vperm.slane %v261_v44, 4  ;;  %v270_v5 = vperm.slane %v261_v44, 7  ;;  %v269_v7 = vperm.slane %v261_v44, 6 }
 0x1b2   :  { %v280_v47 = vsub.f32 %v800_v56, %v264_v45  ;;  %v279_v49 = vsub.f32 %v193_v6, %v263_v46  ;;  %v282_v54 = vsub.f32 %v196_v11, %v266_v50  ;;  %v281_v55 = vsub.f32 %v195_v10, %v265_v51 }
 0x1b3   :  { %v284_v56 = vsub.f32 %v198_v13, %v268_v58  ;;  %v283_v1 = vsub.f32 %v803_v61, %v267_v60  ;;  %v286_v12 = vsub.f32 %v809_v16, %v270_v5  ;;  %v285_v13 = vsub.f32 %v806_v4, %v269_v7 }
 0x1b4   :  { %v289_v52 = vmul.f32 1.442695, %v280_v47  ;;  %v287_v53 = vmul.f32 1.442695, %v279_v49  ;;  %v293_v57 = vmul.f32 1.442695, %v282_v54 }
 0x1b5   :  { %v291_v59 = vmul.f32 1.442695, %v281_v55  ;;  %v297_v2 = vmul.f32 1.442695, %v284_v56  ;;  %v295_v6 = vmul.f32 1.442695, %v283_v1 }
 0x1b6   :  { %579 = vpow2.f32 %v289_v52  ;;  %v301_v14 = vmul.f32 1.442695, %v286_v12  ;;  %v299_v61 = vmul.f32 1.442695, %v285_v13 }
 0x1b7   :  { %581 = vpow2.f32 %v287_v53 }
 0x1b8   :  { %583 = vpow2.f32 %v293_v57 }
 0x1b9   :  { %585 = vpow2.f32 %v291_v59 }
 0x1ba   :  { %587 = vpow2.f32 %v297_v2 }
 0x1bb   :  { %589 = vpow2.f32 %v295_v6 }
 0x1bc   :  { %v832_v62 = vpop.eup %579  ;;  %591 = vpow2.f32 %v301_v14 }
 0x1bd   :  { %v834_v63 = vpop.eup %581  ;;  %315 = vperm.xlu0 %577, %v832_v62   ;;  %593 = vpow2.f32 %v299_v61 }
 0x1be   :  { %312 = vperm.xlu2 %576, %v834_v63   ;;  %v839_v10 = vpop.eup %583 }
 0x1bf   :  { %v841_v11 = vpop.eup %585 }
 0x1c0   :  { %v588_v17 = vpop.eup %587 }
 0x1c1   :  { %v847_v18 = vpop.eup %589 }
 0x1c2   :  { %v592_v19 = vpop.eup %591 }
 0x1c3   :  { %v850_v22 = vpop.eup %593 }
 0x1c5   :  { %321 = vperm.xlu0 %577, %v839_v10  }
 0x1c6   :  { %318 = vperm.xlu2 %576, %v841_v11  }
 0x1cd   :  { %327 = vperm.xlu0 %577, %v588_v17  }
 0x1ce   :  { %324 = vperm.xlu2 %576, %v847_v18  }
 0x1d5   :  { %333 = vperm.xlu0 %577, %v592_v19  }
 0x1d6   :  { %330 = vperm.xlu2 %576, %v850_v22  }
 0x218   :  { %v313_v16 = vpop.permute.xlu2 %312 }
 0x219   :  { %v335_v27 = vperm.slane %v313_v16, %v813_v21 }
 0x220   :  { %v319_v24 = vpop.permute.xlu2 %318 }
 0x221   :  { %v337_v31 = vperm.slane %v319_v24, %v813_v21 }
 0x228   :  { %v325_v25 = vpop.permute.xlu2 %324 }
 0x229   :  { %v339_v36 = vperm.slane %v325_v25, %v813_v21 }
 0x22f   :  { %v316_v23 = vpop.permute.xlu0 %315 }
 0x230   :  { %v336_v26 = vperm.slane %v316_v23, %v813_v21  ;;  %v331_v37 = vpop.permute.xlu2 %330 }
 0x231   :  { %v341_v40 = vperm.slane %v331_v37, %v813_v21 }
 0x232   :  { %v343_v28 = vsel %vm243_vm1, %v336_v26, %v335_v27 }
 0x233   :  { %v344_v32 = vsel %vm245_vm2, %v337_v31, %v343_v28 }
 0x237   :  { %v322_v4 = vpop.permute.xlu0 %321 }
 0x238   :  { %v338_v30 = vperm.slane %v322_v4, %v813_v21 }
 0x23a   :  { %v345_v33 = vsel %vm247_vm3, %v338_v30, %v344_v32 }
 0x23b   :  { %v346_v38 = vsel %vm249_vm4, %v339_v36, %v345_v33 }
 0x23f   :  { %v328_v0 = vpop.permute.xlu0 %327 }
 0x240   :  { %v340_v35 = vperm.slane %v328_v0, %v813_v21 }
 0x242   :  { %v347_v39 = vsel %vm251_vm5, %v340_v35, %v346_v38 }
 0x243   :  { %v348_v43 = vsel %vm253_vm6, %v341_v40, %v347_v39 }
 0x247   :  { %v334_v41 = vpop.permute.xlu0 %333 }
 0x248   :  { %v342_v42 = vperm.slane %v334_v41, %v813_v21 }
 0x24a   :  { %v349_v44 = vsel %vm255_vm7, %v342_v42, %v348_v43 }
 0x24b   :  { %v351_v45 = vsel %vm258_vm8, %v349_v44, 0.0 }
 0x24c   :  { %352 = vadd.xlane.f32.xlu2 %v351_v45 }
 0x2bf   :  { %v353_v46 = vpop.xlane.xlu2 %352 }
 0x2c0   :  { %595 = vrcp.f32 %v353_v46  ;;  %v365_v51 = vand.u32 2147483648, %v353_v46  ;;  %v363_v53 = vand.u32 2147483647, %v353_v46  ;;  %vm359_vm10 = vweird.f32 %v353_v46 }
 0x2c2   :  { %v366_v55 = vor.u32 1.1754944e-38, %v365_v51  ;;  %vm364_vm12 = vcmp.eq.f32.partialorder %v363_v53, 8.507059e+37 }
 0x2c6   :  { %v596_v47 = vpop.eup %595 }
 0x2c7   :  { %v355_v49 = vmul.f32 %v596_v47, %v353_v46  ;;  %vm360_vm9 = vweird.f32 %v596_v47 }
 0x2c8   :  { %vm361_vm11 = vmor %vm359_vm10, %vm360_vm9 }
 0x2c9   :  { %v356_v50 = vsub.f32 1.0, %v355_v49 }
 0x2cb   :  { %v357_v52 = vmul.f32 %v596_v47, %v356_v50 }
 0x2cd   :  { %v358_v54 = vadd.f32 %v596_v47, %v357_v52 }
 0x2cf   :  { %v362_v57 = vsel %vm361_vm11, %v596_v47, %v358_v54 }
 0x2d0   :  { %v367_v58 = vsel %vm364_vm12, %v366_v55, %v362_v57 }
 0x2d1   :  { %v370_v59 = vperm.slane %v367_v58, 1  ;;  %v369_v60 = vperm.slane %v367_v58, 0  ;;  %v374_v2 = vperm.slane %v367_v58, 5  ;;  %v371_v5 = vperm.slane %v367_v58, 2 }
 0x2d2   :  { %v376_v12 = vperm.slane %v367_v58, 7  ;;  %v372_v13 = vperm.slane %v367_v58, 3  ;;  %v373_v16 = vperm.slane %v367_v58, 4 }
 0x2d3   :  { %v386_v56 = vmul.f32 %v832_v62, %v370_v59  ;;  %v385_v1 = vmul.f32 %v834_v63, %v369_v60  ;;  %v390_v6 = vmul.f32 %v588_v17, %v374_v2  ;;  %v387_v7 = vmul.f32 %v841_v11, %v371_v5 }
 0x2d4   :  { %v392_v14 = vmul.f32 %v592_v19, %v376_v12  ;;  %v388_v61 = vmul.f32 %v839_v10, %v372_v13  ;;  %v389_v62 = vmul.f32 %v847_v18, %v373_v16  ;;  %v375_v63 = vperm.slane %v367_v58, 6 }
 0x2d5   :  { %400 = vperm.xlu1 %578, %v386_v56   ;;  %395 = vperm.xlu0 %577, %v385_v1  }
 0x2d6   :  { %v391_v23 = vmul.f32 %v850_v22, %v375_v63 }
 0x2dd   :  { %420 = vperm.xlu1 %578, %v390_v6   ;;  %405 = vperm.xlu0 %577, %v387_v7  }
 0x2e5   :  { %430 = vperm.xlu1 %578, %v392_v14   ;;  %410 = vperm.xlu0 %577, %v388_v61  }
 0x2ed   :  { %415 = vperm.xlu0 %577, %v389_v62  }
 0x2f5   :  { %425 = vperm.xlu0 %577, %v391_v23  }
 0x347   :  { %v401_v17 = vpop.permute.xlu1 %400  ;;  %v396_v24 = vpop.permute.xlu0 %395 }
 0x348   :  { %v434_v25 = vmul.f32 %v401_v17, %v775_v15  ;;  %v433_v19 = vmul.f32 %v396_v24, %v768_v3  ;;  %v515_v41 = vperm.slane %v401_v17, %v813_v21 }
 0x34a   :  { %v448_v26 = vsel %vm103_vm0, %v434_v25, 0.0  ;;  %v441_v18 = vsel %vm103_vm0, %v433_v19, 0.0 }
 0x34b   :  { %v449_v28 = vrot.slane %v448_v26, 4  ;;  %v442_v30 = vrot.slane %v441_v18, 4 }
 0x34d   :  { %v443_v36 = vadd.f32 %v442_v30, %v441_v18 }
 0x34f   :  { %v875_v11 = vpop.permute.xlu1 %420  ;;  %v406_v4 = vpop.permute.xlu0 %405  ;;  %v444_v43 = vrot.slane %v443_v36, 2 }
 0x350   :  { %v435_v10 = vmul.f32 %v406_v4, %v772_v9  ;;  %v438_v15 = vmul.f32 %v875_v11, %v796_v48  ;;  %v450_v9 = vadd.f32 %v449_v28, %v448_v26  ;;  %v516_v45 = vperm.slane %v406_v4, %v813_v21 }
 0x351   :  { %v445_v57 = vadd.f32 %v444_v43, %v443_v36  ;;  %v519_v7 = vperm.slane %v875_v11, %v813_v21 }
 0x352   :  { %v455_v27 = vsel %vm103_vm0, %v435_v10, 0.0  ;;  %v476_v37 = vsel %vm103_vm0, %v438_v15, 0.0  ;;  %v451_v40 = vrot.slane %v450_v9, 2 }
 0x353   :  { %v456_v32 = vrot.slane %v455_v27, 4  ;;  %v477_v44 = vrot.slane %v476_v37, 4  ;;  %v446_v14 = vrot.slane %v445_v57, 1 }
 0x354   :  { %v452_v53 = vadd.f32 %v451_v40, %v450_v9 }
 0x355   :  { %v457_v38 = vadd.f32 %v456_v32, %v455_v27  ;;  %v478_v58 = vadd.f32 %v477_v44, %v476_v37  ;;  %v447_v27 = vadd.f32 %v446_v14, %v445_v57 }
 0x356   :  { %v453_v6 = vrot.slane %v452_v53, 1 }
 0x357   :  { %v411_v22 = vpop.permute.xlu0 %410  ;;  %v883_v31 = vpop.permute.xlu1 %430  ;;  %v458_v46 = vrot.slane %v457_v38, 2  ;;  %v479_v61 = vrot.slane %v478_v58, 2 }
 0x358   :  { %v436_v0 = vmul.f32 %v411_v22, %v770_v8  ;;  %v440_v33 = vmul.f32 %v883_v31, %v792_v34  ;;  %v514_v8 = vperm.slane %v396_v24, %v813_v21  ;;  %v517_v47 = vperm.slane %v411_v22, %v813_v21 }
 0x359   :  { %v459_v60 = vadd.f32 %v458_v46, %v457_v38  ;;  %v521_v23 = vperm.slane %v883_v31, %v813_v21  ;;  %v454_v18 = vadd.f32 %v453_v6, %v452_v53  ;;  %v480_v28 = vadd.f32 %v479_v61, %v478_v58 }
 0x35a   :  { %v462_v3 = vsel %vm103_vm0, %v436_v0, 0.0  ;;  %v490_v48 = vsel %vm103_vm0, %v440_v33, 0.0  ;;  %v522_v54 = vsel %vm243_vm1, %v515_v41, %v514_v8 }
 0x35b   :  { %v463_v35 = vrot.slane %v462_v3, 4  ;;  %v491_v49 = vrot.slane %v490_v48, 4  ;;  %v523_v59 = vsel %vm245_vm2, %v516_v45, %v522_v54  ;;  %v460_v63 = vrot.slane %v459_v60, 1 }
 0x35c   :  { %v505_v32 = vsel %vm243_vm1, %v454_v18, %v447_v27 }
 0x35d   :  { %v464_v39 = vadd.f32 %v463_v35, %v462_v3  ;;  %v492_v1 = vadd.f32 %v491_v49, %v490_v48  ;;  %v481_v3 = vrot.slane %v480_v28, 1 }
 0x35f   :  { %v416_v42 = vpop.permute.xlu0 %415  ;;  %v465_v50 = vrot.slane %v464_v39, 2  ;;  %v493_v11 = vrot.slane %v492_v1, 2 }
 0x360   :  { %v437_v34 = vmul.f32 %v416_v42, %v780_v20  ;;  %v518_v52 = vperm.slane %v416_v42, %v813_v21  ;;  %v524_v20 = vsel %vm247_vm3, %v517_v47, %v523_v59 }
 0x361   :  { %v466_v2 = vadd.f32 %v465_v50, %v464_v39  ;;  %v494_v30 = vadd.f32 %v493_v11, %v492_v1  ;;  %v482_v39 = vadd.f32 %v481_v3, %v480_v28 }
 0x362   :  { %v469_v51 = vsel %vm103_vm0, %v437_v34, 0.0  ;;  %v525_v5 = vsel %vm249_vm4, %v518_v52, %v524_v20 }
 0x363   :  { %v470_v55 = vrot.slane %v469_v51, 4  ;;  %v526_v24 = vsel %vm251_vm5, %v519_v7, %v525_v5  ;;  %v467_v4 = vrot.slane %v466_v2, 1  ;;  %v495_v35 = vrot.slane %v494_v30, 1 }
 0x365   :  { %v471_v56 = vadd.f32 %v470_v55, %v469_v51  ;;  %v468_v31 = vadd.f32 %v467_v4, %v466_v2  ;;  %v496_v41 = vadd.f32 %v495_v35, %v494_v30 }
 0x367   :  { %v472_v12 = vrot.slane %v471_v56, 2  ;;  %v426_v13 = vpop.permute.xlu0 %425 }
 0x368   :  { %v439_v16 = vmul.f32 %v426_v13, %v788_v29  ;;  %v520_v62 = vperm.slane %v426_v13, %v813_v21  ;;  %v461_v21 = vadd.f32 %v460_v63, %v459_v60 }
 0x369   :  { %v473_v17 = vadd.f32 %v472_v12, %v471_v56 }
 0x36a   :  { %v483_v25 = vsel %vm103_vm0, %v439_v16, 0.0  ;;  %v527_v19 = vsel %vm253_vm6, %v520_v62, %v526_v24  ;;  %v506_v9 = vsel %vm245_vm2, %v461_v21, %v505_v32 }
 0x36b   :  { %v474_v10 = vrot.slane %v473_v17, 1  ;;  %v484_v26 = vrot.slane %v483_v25, 4  ;;  %v528_v29 = vsel %vm255_vm7, %v521_v23, %v527_v19  ;;  %v507_v36 = vsel %vm247_vm3, %v468_v31, %v506_v9 }
 0x36c   :  { %530 = vst.msk [vmem:[#allocation9] sm:$0xff] %vm258_vm8, %v528_v29 }
 0x36d   :  { %v485_v22 = vadd.f32 %v484_v26, %v483_v25  ;;  %552 = dma.vmem_to_hbm [thread:$0]  %s548_s2, 128, %s550_s7, [#allocation10]   ;;  %v475_v0 = vadd.f32 %v474_v10, %v473_v17 }
 0x36f   :  { %v486_v15 = vrot.slane %v485_v22, 2  ;;  %v508_v38 = vsel %vm249_vm4, %v475_v0, %v507_v36 }
 0x370   :  { %v509_v8 = vsel %vm251_vm5, %v482_v39, %v508_v38 }
 0x371   :  { %v487_v33 = vadd.f32 %v486_v15, %v485_v22 }
 0x373   :  { %v488_v37 = vrot.slane %v487_v33, 1 }
 0x375   :  { %v489_v40 = vadd.f32 %v488_v37, %v487_v33 }
 0x377   :  { %v510_v48 = vsel %vm253_vm6, %v489_v40, %v509_v8 }
 0x378   :  { %v511_v42 = vsel %vm255_vm7, %v496_v41, %v510_v48 }
 0x379   :  { %513 = vst.msk [vmem:[#allocation8] sm:$0xff] %vm103_vm0, %v511_v42 }
 0x37a   :  { %541 = dma.vmem_to_hbm [thread:$0]  %s537_s8, 128, %s539_s11, [#allocation4]  }
 0x37b   :  { %721 = dma.done.wait [#allocation4], 128  }
 0x37c   :  { %722 = vsyncadd [#allocation4], 4294967168 }
 0x37d   :  { %723 = dma.done.wait [#allocation10], 128  }
 0x37e   :  { %724 = vsyncadd [#allocation10], 4294967168 }
 0x37f   :  { %561 = vsyncpa [#allocation3], 1 }
 0x380   :  { %562 = vsyncpa [#allocation6], 1 }
 0x381   :  { %563 = vsyncpa [#allocation4], 1 }
 0x382   :  { %564 = vsyncpa [#allocation10], 1 }

</bundles_post_ra>
